<compile_context>
chip_gen: v5e
topology: v5e:2x2
jax: 0.10.0
libtpu: 0.0.40
codegen_flags: <defaults>
</compile_context>

<pallas_src>
import functools

import numpy as np
import jax
import jax.numpy as jnp
from jax.experimental import pallas as pl
from jax.experimental.pallas import tpu as pltpu


PARAM_LANES = 512  # lane width of the flat parameter buffer (mult. of 128)


def _round_up(x, m):
    return ((x + m - 1) // m) * m


def _pixel_tile(P, max_tile=2048):
    """Lane tile for the pixel axis: a multiple of 128 (unmasked stores) or the
    full spatial extent when P < 128.  max_tile ~2048 on v6e (128 MiB VMEM);
    halve on v7x (64 MiB) if needed -- footprints here are tiny either way."""
    if P <= 128:
        return int(P)
    return int(min(max_tile, (P // 128) * 128))


# ----------------------------- Pallas kernels ------------------------------

def _cm_matmul_bias_kernel(x_ref, w_ref, b_ref, o_ref):
    # x: (Cin, TP), w: (Cout, Cin), b: (Cout, 1) -> o: (Cout, TP)
    o_ref[...] = (
        jnp.dot(w_ref[...], x_ref[...], preferred_element_type=jnp.float32)
        + b_ref[...]
    )


def _refine_softmax_kernel(sl_ref, lg_ref, m2_ref, un_ref, o_ref):
    # Fused: score = softmax(prototype logits) over channels (sublane axis),
    #   soft_labels[mask2]  = (soft_labels * score)[mask2]
    #   soft_labels[unconf] = (updated_soft_labels * score)[unconf]
    # All blocks are channel-major: (C, TP) slabs, masks are (1, TP).
    lg = lg_ref[...]
    m = jnp.max(lg, axis=0, keepdims=True)                     # (1, TP)
    e = jnp.exp(lg - m)
    denom = jnp.sum(e, axis=0, keepdims=True)
    sc = e * pl.reciprocal(denom, approx=True)                 # EUP slot, free

    sl = sl_ref[...]
    m2 = m2_ref[...] > 0.5                                     # broadcast over C
    un = un_ref[...] > 0.5
    sl1 = jnp.where(m2, sl * sc, sl)
    o_ref[...] = jnp.where(un, sl1 * sc, sl1)


def _class_stats_kernel(out_ref, feat_ref, mconf_ref, mext_ref,
                        sumc_ref, sume_ref, cntc_ref, cnte_ref, cntr_ref, *, P):
    # grid = (B, cdiv(P, TP)); pixel axis last, accumulated in VMEM residents.
    #   out_ref : (C, TP)  segmentation logits (channel-major)
    #   feat_ref: (D, TP)  low-dim features
    #   mconf_ref, mext_ref: (1, TP) validity masks (float 0/1)
    # outputs (per image, resident across the pixel axis):
    #   sumc/sume: (C, D) per-class masked feature sums (conf / extend masks)
    #   cntc/cnte: (C, 1) per-class masked pixel counts
    #   cntr     : (C, 1) per-class raw argmax pixel counts
    p = pl.program_id(1)

    @pl.when(p == 0)
    def _():
        sumc_ref[...] = jnp.zeros_like(sumc_ref)
        sume_ref[...] = jnp.zeros_like(sume_ref)
        cntc_ref[...] = jnp.zeros_like(cntc_ref)
        cnte_ref[...] = jnp.zeros_like(cnte_ref)
        cntr_ref[...] = jnp.zeros_like(cntr_ref)

    logits = out_ref[...]                                        # (C, TP)
    C, TP = logits.shape

    # argmax(softmax(x)) == argmax(x): argmax over the (tiny) channel axis with
    # lowest-index tie-break (== torch.argmax semantics).
    cls = jax.lax.broadcasted_iota(jnp.int32, (C, TP), 0)
    mx = jnp.max(logits, axis=0, keepdims=True)
    idx = jnp.min(jnp.where(logits == mx, cls, C), axis=0, keepdims=True)
    onehot = (cls == idx).astype(jnp.float32)                    # (C, TP)

    feat = feat_ref[...]                                         # (D, TP)
    mc = mconf_ref[...]                                          # (1, TP)
    me = mext_ref[...]

    # Partial tail tile: outputs are resident accumulators, so garbage lanes
    # MUST be zeroed (use where, not *, so Inf/NaN garbage cannot leak).
    if P % TP != 0:
        lane = jax.lax.broadcasted_iota(jnp.int32, (1, TP), 1) + p * TP
        valid = lane < P                                         # (1, TP) bool
        onehot = onehot * valid.astype(jnp.float32)
        feat = jnp.where(valid, feat, 0.0)
        mc = jnp.where(valid, mc, 0.0)
        me = jnp.where(valid, me, 0.0)

    oh_c = onehot * mc
    oh_e = onehot * me

    # contract the lane (pixel) axis -> (C, D); maps natively to the MXU.
    dnums = (((1,), (1,)), ((), ()))
    sumc_ref[...] += jax.lax.dot_general(oh_c, feat, dnums,
                                         preferred_element_type=jnp.float32)
    sume_ref[...] += jax.lax.dot_general(oh_e, feat, dnums,
                                         preferred_element_type=jnp.float32)
    cntc_ref[...] += jnp.sum(oh_c, axis=1, keepdims=True)
    cnte_ref[...] += jnp.sum(oh_e, axis=1, keepdims=True)
    cntr_ref[...] += jnp.sum(onehot, axis=1, keepdims=True)


def _momentum_kernel(q_ref, k_ref, o_ref, *, momentum):
    # teacher = teacher * m + student * (1 - m)   (elementwise, lane-dense)
    o_ref[...] = k_ref[...] * momentum + q_ref[...] * (1.0 - momentum)


# ----------------------------- Pallas wrappers ------------------------------

def pallas_matmul_bias_cm(x, w, b, max_tile=2048):
    """Channel-major 1x1-conv head: out[n] = w @ x[n] + b.
    x: (B, Cin, P); w: (Cout, Cin); b: (Cout,).  Lane dim = pixels (dense)."""
    x = x.astype(jnp.float32)
    B, Cin, P = x.shape
    w = w.astype(jnp.float32)
    Cout = w.shape[0]
    b2 = b.astype(jnp.float32).reshape(Cout, 1)
    TP = _pixel_tile(P, max_tile)
    grid = (B, pl.cdiv(P, TP))
    return pl.pallas_call(
        _cm_matmul_bias_kernel,
        out_shape=jax.ShapeDtypeStruct((B, Cout, P), jnp.float32),
        grid=grid,
        in_specs=[
            pl.BlockSpec((None, Cin, TP), lambda n, p: (n, 0, p)),
            pl.BlockSpec((Cout, Cin), lambda n, p: (0, 0)),
            pl.BlockSpec((Cout, 1), lambda n, p: (0, 0)),
        ],
        out_specs=pl.BlockSpec((None, Cout, TP), lambda n, p: (n, 0, p)),
        compiler_params=pltpu.CompilerParams(
            dimension_semantics=("parallel", "parallel")),
    )(x, w, b2)


def pallas_refine_cm(soft_labels, logits, m2, un, max_tile=2048):
    """Fused channel-softmax(logits) + masked soft-label refinement.
    soft_labels, logits: (B, C, P); m2, un: (B, 1, P) -- all channel-major."""
    B, C, P = soft_labels.shape
    TP = _pixel_tile(P, max_tile)
    grid = (B, pl.cdiv(P, TP))
    return pl.pallas_call(
        _refine_softmax_kernel,
        out_shape=jax.ShapeDtypeStruct((B, C, P), jnp.float32),
        grid=grid,
        in_specs=[pl.BlockSpec((None, C, TP), lambda n, p: (n, 0, p)),
                  pl.BlockSpec((None, C, TP), lambda n, p: (n, 0, p)),
                  pl.BlockSpec((None, 1, TP), lambda n, p: (n, 0, p)),
                  pl.BlockSpec((None, 1, TP), lambda n, p: (n, 0, p))],
        out_specs=pl.BlockSpec((None, C, TP), lambda n, p: (n, 0, p)),
        compiler_params=pltpu.CompilerParams(
            dimension_semantics=("parallel", "parallel")),
    )(soft_labels.astype(jnp.float32), logits.astype(jnp.float32),
      m2.astype(jnp.float32), un.astype(jnp.float32))


def class_stats(outputs, feats, mask_conf, mask_ext, max_tile=1024):
    """Per-image / per-class masked reductions (calculate_mean_vector hot path)
    for BOTH masks in a single streaming pass over outputs/feats.
    outputs: (B, C, Hf, Wf); feats: (B, D, Hf, Wf); masks: (B, 1, Hf, Wf)."""
    B, C, Hf, Wf = outputs.shape
    D = feats.shape[1]
    P = Hf * Wf
    of = outputs.reshape(B, C, P).astype(jnp.float32)      # no transposes: NCHW
    ff = feats.reshape(B, D, P).astype(jnp.float32)        # is already channel-
    mc = mask_conf.reshape(B, 1, P).astype(jnp.float32)    # major.
    me = mask_ext.reshape(B, 1, P).astype(jnp.float32)
    TP = _pixel_tile(P, max_tile)
    grid = (B, pl.cdiv(P, TP))
    kern = functools.partial(_class_stats_kernel, P=P)
    return pl.pallas_call(
        kern,
        out_shape=(jax.ShapeDtypeStruct((B, C, D), jnp.float32),
                   jax.ShapeDtypeStruct((B, C, D), jnp.float32),
                   jax.ShapeDtypeStruct((B, C, 1), jnp.float32),
                   jax.ShapeDtypeStruct((B, C, 1), jnp.float32),
                   jax.ShapeDtypeStruct((B, C, 1), jnp.float32)),
        grid=grid,
        in_specs=[pl.BlockSpec((None, C, TP), lambda n, p: (n, 0, p)),
                  pl.BlockSpec((None, D, TP), lambda n, p: (n, 0, p)),
                  pl.BlockSpec((None, 1, TP), lambda n, p: (n, 0, p)),
                  pl.BlockSpec((None, 1, TP), lambda n, p: (n, 0, p))],
        out_specs=(pl.BlockSpec((None, C, D), lambda n, p: (n, 0, 0)),
                   pl.BlockSpec((None, C, D), lambda n, p: (n, 0, 0)),
                   pl.BlockSpec((None, C, 1), lambda n, p: (n, 0, 0)),
                   pl.BlockSpec((None, C, 1), lambda n, p: (n, 0, 0)),
                   pl.BlockSpec((None, C, 1), lambda n, p: (n, 0, 0))),
        compiler_params=pltpu.CompilerParams(
            dimension_semantics=("parallel", "arbitrary")),
    )(of, ff, mc, me)


# ------------------------ flat parameter buffer / EMA ------------------------

def flatten_params(params):
    """Pack a param dict into a persistent lane/sublane-dense (rows, 512)
    float32 buffer + static unpack metadata."""
    # TODO(synk): params are stored in float32 (original torch keeps each
    # parameter's own dtype).
    names = sorted(params.keys())
    flat = jnp.concatenate(
        [params[n].reshape(-1).astype(jnp.float32) for n in names])
    total = int(flat.shape[0])
    padded = _round_up(max(total, 1), PARAM_LANES * 8)
    flat = jnp.pad(flat, (0, padded - total))
    meta, off = [], 0
    for n in names:
        sz = int(np.prod(params[n].shape))
        meta.append((n, tuple(params[n].shape), off, sz))
        off += sz
    return flat.reshape(padded // PARAM_LANES, PARAM_LANES), tuple(meta)


def unflatten_params(flat2d, meta):
    flat = flat2d.reshape(-1)
    return {n: flat[off:off + sz].reshape(shape) for n, shape, off, sz in meta}


def momentum_update(base_flat, teacher_flat, momentum):
    """EMA teacher update over the persistent flat (rows, 512) param buffer.
    One lane-dense elementwise pallas_call, aliased in place (input 1 -> out)."""
    rows, lanes = teacher_flat.shape
    tile = min(2048, rows)
    # v7x megacore: prefer >=2 grid steps when the buffer is big enough; on
    # v5e/v6e (1 TC) the largest tile would be kept instead.
    if rows >= 16 and pl.cdiv(rows, tile) < 2:
        tile = _round_up(pl.cdiv(rows, 2), 8)
    grid = (pl.cdiv(rows, tile),)
    return pl.pallas_call(
        functools.partial(_momentum_kernel, momentum=momentum),
        out_shape=jax.ShapeDtypeStruct((rows, lanes), jnp.float32),
        grid=grid,
        in_specs=[pl.BlockSpec((tile, lanes), lambda i: (i, 0)),
                  pl.BlockSpec((tile, lanes), lambda i: (i, 0))],
        out_specs=pl.BlockSpec((tile, lanes), lambda i: (i, 0)),
        input_output_aliases={1: 0},      # teacher buffer updated in place
        compiler_params=pltpu.CompilerParams(dimension_semantics=("parallel",)),
    )(base_flat, teacher_flat)


# ------------------------------- JAX glue -----------------------------------

def simple_seg_net(flat_params, meta, x, num_classes, low_dim):
    """Synthetic baseNet/teacherNet: stride-2 'encoder' + fused 1x1-conv heads,
    channel-major end to end (no NCHW<->NHWC transposes)."""
    # TODO(synk): the real baseNet / teacherNet backbones are external modules;
    # synthesized here as a subsample + fused 1x1-conv segmentation head.
    p = unflatten_params(flat_params, meta)
    xd = x[:, :, ::2, ::2]                                   # (B, Cin, Hf, Wf)
    B, Cin, Hf, Wf = xd.shape
    w_cat = jnp.concatenate([p["w_out"], p["w_feat"]], axis=0)   # (nc+ld, Cin)
    b_cat = jnp.concatenate([p["b_out"], p["b_feat"]], axis=0)
    out = pallas_matmul_bias_cm(xd.reshape(B, Cin, Hf * Wf), w_cat, b_cat)
    out = out.reshape(B, num_classes + low_dim, Hf, Wf)
    outputs = out[:, :num_classes]
    feats = out[:, num_classes:]
    return (outputs, feats)       # res[0]=outputs, res[-1]=feats


def nearest_interp(x, out_h, out_w):
    # matches torch F.interpolate(mode='nearest'):  src = floor(dst * in/out)
    h, w = x.shape[2], x.shape[3]
    yi = np.floor(np.arange(out_h) * (h / out_h)).astype(np.int32)
    xi = np.floor(np.arange(out_w) * (w / out_w)).astype(np.int32)
    return x[:, :, yi][:, :, :, xi]


def _bilinear_matrix(n_out, n_in):
    """Dense (n_out, n_in) 1-D interpolation matrix matching
    F.interpolate(mode='bilinear', align_corners=True) along one axis."""
    M = np.zeros((n_out, n_in), np.float32)
    if n_out == 1 or n_in == 1:
        M[:, 0] = 1.0
        return jnp.asarray(M)
    src = np.arange(n_out, dtype=np.float64) * (n_in - 1) / (n_out - 1)
    i0 = np.clip(np.floor(src).astype(np.int64), 0, n_in - 1)
    i1 = np.minimum(i0 + 1, n_in - 1)
    w1 = (src - i0).astype(np.float32)
    M[np.arange(n_out), i0] += 1.0 - w1
    M[np.arange(n_out), i1] += w1
    return jnp.asarray(M)


def bilinear_upsample_mm(x, out_h, out_w):
    """Separable bilinear upsample (align_corners=True) as two matmuls
    up = Ry @ x @ Rx^T -- runs on the MXU, no fancy-index gathers."""
    # TODO(synk): could be fused into the refine Pallas kernel (scalar-prefetch
    # row weights); left as XLA dot_generals here.
    h, w = x.shape[2], x.shape[3]
    if (out_h, out_w) == (h, w):
        return x.astype(jnp.float32)
    Ry = _bilinear_matrix(out_h, h)
    Rx = _bilinear_matrix(out_w, w)
    t = jnp.einsum('bchw,Hh->bcHw', x.astype(jnp.float32), Ry)
    return jnp.einsum('bcHw,Ww->bcHW', t, Rx)


def proto_logits(feats, prototypes, out_h, out_w):
    """prototypes @ feats (channel-major Pallas matmul) -> separable bilinear
    upsample.  Channel softmax is fused into the refine kernel."""
    B, D, Hf, Wf = feats.shape
    C = prototypes.shape[0]
    lg = pallas_matmul_bias_cm(feats.reshape(B, D, Hf * Wf),
                               prototypes.astype(jnp.float32),
                               jnp.zeros((C,), jnp.float32))
    return bilinear_upsample_mm(lg.reshape(B, C, Hf, Wf), out_h, out_w)


def device_prototype_update(prototypes, sums, cnt_m, cnt_raw, momentum):
    """(n, t)-ordered prototype EMA update, fully on device (no host sync).
    Matches the sequential torch loop: batches applied in order n=0..B-1."""
    prot = prototypes.astype(jnp.float32)
    B = sums.shape[0]
    for n in range(B):                          # B small & static -> unrolled
        cm = cnt_m[n, :, 0]                     # (C,) masked counts
        cr = cnt_raw[n, :, 0]                   # (C,) raw argmax counts
        valid = (cm != 0.0) & (cr >= 10.0)      # scale_factor==0 / count<10 skip
        denom = jnp.where(cm == 0.0, 1.0, cm)
        vec = sums[n] / denom[:, None]          # (C, D) masked class means
        upd = prot * momentum + (1.0 - momentum) * vec
        prot = jnp.where(valid[:, None], upd, prot)
    return prot


# --------------------------- MomentumNet forward ----------------------------

def momentum_net_forward(state, x, *, momentum, num_classes, low_dim,
                         use_teacher=False, update_teacher=False,
                         plabels=None, update_prototype=False,
                         refine_outputs=False, labels=None,
                         conf_plabels=None, soft_labels=None):
    base_flat = state["base_flat"]
    teacher_flat = state["teacher_flat"]
    meta = state["param_meta"]
    prot_extend = state["prototypes_extend"]
    prot_conf = state["prototypes_conf"]
    stats = dict(state["stats"])

    if update_teacher:
        teacher_flat = momentum_update(base_flat, teacher_flat, momentum)

    res = simple_seg_net(teacher_flat if use_teacher else base_flat, meta,
                         x, num_classes, low_dim)
    outputs, feats = res[0], res[-1]
    Hf, Wf = feats.shape[2], feats.shape[3]

    extend_mask = unconf_mask = None
    plab_f = cplab_f = None
    if plabels is not None and conf_plabels is not None:
        plab_f = plabels[:, None].astype(jnp.float32)           # (B, 1, H, W)
        cplab_f = conf_plabels[:, None].astype(jnp.float32)
        extend_mask = cplab_f != plab_f
        unconf_mask = plab_f == 255.0

    if update_prototype:
        assert conf_plabels is not None and plabels is not None
        plab_i = nearest_interp(plab_f, Hf, Wf)
        cplab_i = nearest_interp(cplab_f, Hf, Wf)
        extend_mask_i = (cplab_i != plab_i).astype(jnp.float32)
        conf_valid_i = (cplab_i != 255.0).astype(jnp.float32)   # mask[plabel==255]=False

        # ONE streaming pass over outputs/feats serves both masks.
        sum_c, sum_e, cnt_c, cnt_e, cnt_r = class_stats(
            outputs, feats, conf_valid_i, extend_mask_i)
        prot_conf = device_prototype_update(prot_conf, sum_c, cnt_c, cnt_r, momentum)
        prot_extend = device_prototype_update(prot_extend, sum_e, cnt_e, cnt_r, momentum)

    new_soft_labels = soft_labels
    if refine_outputs:
        assert soft_labels is not None
        B, C, Hl, Wl = soft_labels.shape
        # NOTE: torch computes score_prot_extend and prob_sort but never uses
        # them -> skipped entirely.
        logits_conf = proto_logits(feats, prot_conf, Hl, Wl)

        preds_before = jnp.argmax(soft_labels, axis=1)

        new_f = pallas_refine_cm(
            soft_labels.reshape(B, C, Hl * Wl),
            logits_conf.reshape(B, C, Hl * Wl),
            extend_mask.astype(jnp.float32).reshape(B, 1, Hl * Wl),
            unconf_mask.astype(jnp.float32).reshape(B, 1, Hl * Wl))
        new_soft_labels = new_f.reshape(B, C, Hl, Wl)
        preds_after = jnp.argmax(new_soft_labels, axis=1)

        # Bookkeeping counters kept on device (no host sync in the hot loop).
        if labels is not None:
            changed = preds_before != preds_after
            valid = labels != 255
            m = changed & valid
            stats["refine_num"] = stats["refine_num"] + jnp.sum(m).astype(jnp.int32)
            stats["total_num"] = stats["total_num"] + jnp.int32(
                labels.shape[0] * labels.shape[1] * labels.shape[2])
            stats["corect_num"] = stats["corect_num"] + jnp.sum(
                m & (preds_after == labels)).astype(jnp.int32)
            stats["corect_2_error_num"] = stats["corect_2_error_num"] + jnp.sum(
                m & (preds_before == labels)).astype(jnp.int32)

    new_state = dict(state)
    new_state["teacher_flat"] = teacher_flat
    new_state["prototypes_extend"] = prot_extend
    new_state["prototypes_conf"] = prot_conf
    new_state["stats"] = stats
    return res, new_soft_labels, new_state


# ----------------------------------- main ------------------------------------

if __name__ == "__main__":
    B, Cin, H, W = 2, 4, 16, 16
    NUM_CLASSES, LOW_DIM = 5, 8
    MOMENTUM = 0.99

    key = jax.random.PRNGKey(0)
    keys = jax.random.split(key, 10)

    def make_params(k):
        k1, k2, k3, k4 = jax.random.split(k, 4)
        return {
            "w_out": jax.random.normal(k1, (NUM_CLASSES, Cin), jnp.float32) * 0.5,
            "b_out": jax.random.normal(k2, (NUM_CLASSES,), jnp.float32) * 0.1,
            "w_feat": jax.random.normal(k3, (LOW_DIM, Cin), jnp.float32) * 0.5,
            "b_feat": jax.random.normal(k4, (LOW_DIM,), jnp.float32) * 0.1,
        }

    base_flat, param_meta = flatten_params(make_params(keys[0]))
    teacher_flat, _ = flatten_params(make_params(keys[1]))

    state = {
        "base_flat": base_flat,
        "teacher_flat": teacher_flat,
        "param_meta": param_meta,
        "prototypes_extend": jnp.zeros((NUM_CLASSES, LOW_DIM), jnp.float32),
        "prototypes_conf": jnp.zeros((NUM_CLASSES, LOW_DIM), jnp.float32),
        "stats": {"corect_num": jnp.int32(0), "refine_num": jnp.int32(0),
                  "total_num": jnp.int32(0), "corect_2_error_num": jnp.int32(0)},
    }

    x = jax.random.normal(keys[2], (B, Cin, H, W), jnp.float32)

    raw_plab = jax.random.randint(keys[3], (B, H, W), 0, NUM_CLASSES)
    plabels = jnp.where(jax.random.uniform(keys[4], (B, H, W)) < 0.15,
                        255, raw_plab).astype(jnp.int32)
    raw_conf = jax.random.randint(keys[5], (B, H, W), 0, NUM_CLASSES)
    conf_plabels = jnp.where(jax.random.uniform(keys[6], (B, H, W)) < 0.30,
                             255, raw_conf).astype(jnp.int32)
    soft_labels = jax.nn.softmax(
        jax.random.normal(keys[7], (B, NUM_CLASSES, H, W), jnp.float32), axis=1)
    labels = jnp.where(jax.random.uniform(keys[8], (B, H, W)) < 0.1, 255,
                       jax.random.randint(keys[9], (B, H, W), 0, NUM_CLASSES)
                       ).astype(jnp.int32)

    res, refined_soft_labels, new_state = momentum_net_forward(
        state, x,
        momentum=MOMENTUM, num_classes=NUM_CLASSES, low_dim=LOW_DIM,
        use_teacher=False, update_teacher=True,
        plabels=plabels, conf_plabels=conf_plabels,
        update_prototype=True, refine_outputs=True,
        labels=labels, soft_labels=soft_labels)

    jax.block_until_ready(res)
    jax.block_until_ready(refined_soft_labels)
    jax.block_until_ready(new_state["teacher_flat"])
    jax.block_until_ready(new_state["prototypes_conf"])
    jax.block_until_ready(new_state["prototypes_extend"])
    jax.block_until_ready(new_state["stats"]["refine_num"])

    ok = bool(jnp.all(jnp.isfinite(refined_soft_labels))) and \
        bool(jnp.all(jnp.isfinite(new_state["prototypes_conf"]))) and \
        bool(jnp.all(jnp.isfinite(new_state["prototypes_extend"])))
    if not ok:
        raise RuntimeError("non-finite values in outputs")
    print("KERNEL_OK")
</pallas_src>

<mosaic_0001>
module attributes {stable_mosaic.version = 11 : i64} {
  func.func @_momentum_kernel(%arg0: i32, %arg1: memref<8x512xf32, #tpu.memory_space<vmem>>, %arg2: memref<8x512xf32, #tpu.memory_space<vmem>>, %arg3: memref<8x512xf32, #tpu.memory_space<vmem>>) attributes {dimension_semantics = [#tpu.dimension_semantics<parallel>], iteration_bounds = array<i64: 1>, scalar_prefetch = 0 : i64, scratch_operands = 0 : i64, tpu.core_type = #tpu.core_type<tc>, window_params = [{transform_indices = @transform_0, window_bounds = array<i64: 8, 512>}, {transform_indices = @transform_1, window_bounds = array<i64: 8, 512>}, {transform_indices = @transform_2, window_bounds = array<i64: 8, 512>}]} {
    %c0 = arith.constant 0 : index
    %c0_0 = arith.constant 0 : index
    %0 = vector.load %arg2[%c0, %c0_0] : memref<8x512xf32, #tpu.memory_space<vmem>>, vector<8x512xf32>
    %cst = arith.constant 9.900000e-01 : f32
    %1 = vector.broadcast %cst : f32 to vector<8x512xf32>
    %2 = arith.mulf %0, %1 : vector<8x512xf32>
    %c0_1 = arith.constant 0 : index
    %c0_2 = arith.constant 0 : index
    %3 = vector.load %arg1[%c0_1, %c0_2] : memref<8x512xf32, #tpu.memory_space<vmem>>, vector<8x512xf32>
    %cst_3 = arith.constant 0.00999999977 : f32
    %4 = vector.broadcast %cst_3 : f32 to vector<8x512xf32>
    %5 = arith.mulf %3, %4 : vector<8x512xf32>
    %6 = arith.addf %2, %5 : vector<8x512xf32>
    %c0_4 = arith.constant 0 : index
    %c0_5 = arith.constant 0 : index
    %7 = vector.load %arg3[%c0_4, %c0_5] : memref<8x512xf32, #tpu.memory_space<vmem>>, vector<8x512xf32>
    tpu.vector_store %arg3[%c0_4, %c0_5], %6 {strides = array<i32>} : memref<8x512xf32, #tpu.memory_space<vmem>>, vector<8x512xf32>,
    return
  }
  func.func @transform_0(%arg0: i32) -> (i32, i32) {
    %c0_i32 = arith.constant 0 : i32
    %c0_i32_0 = arith.constant 0 : i32
    return %arg0, %c0_i32 : i32, i32
  }
  func.func @transform_1(%arg0: i32) -> (i32, i32) {
    %c0_i32 = arith.constant 0 : i32
    %c0_i32_0 = arith.constant 0 : i32
    return %arg0, %c0_i32 : i32, i32
  }
  func.func @transform_2(%arg0: i32) -> (i32, i32) {
    %c0_i32 = arith.constant 0 : i32
    %c0_i32_0 = arith.constant 0 : i32
    return %arg0, %c0_i32 : i32, i32
  }
}

</mosaic_0001>

<bundles_post_ra>
// kernel: tpu_custom_call.1
= control target key start
LH: loop header
LB: loop body
LE: loop exit
PB: predicated region body
PF: predicated region fallthrough
CT: control target
= control target key end

     0   :  { %7 = vsyncpa [#allocation3], 0  ;;  %s156_s0 = inlined_call_operand.vmem [shape: f32[8,512], index: 0, kind: input, shape index: {}]   ;;  %s157_s1 = inlined_call_operand.hbm [shape: f32[8,512], index: 1, kind: input, shape index: {}, may-alias: {1,2}]   ;;  %s158_s2 = inlined_call_operand.hbm [shape: f32[8,512], index: 2, kind: output, shape index: {}, may-alias: {1,2}]  }
   0x1   :  { %8 = vsyncpa [#allocation4], 0  ;;  %s16_s11 = sshll.u32 %s157_s1, 4  ;;  %s121_s12 = smov [#allocation2]   ;;  %s17_s11 = int_to_ptr.hbm [resolvable:$true] %s16_s11 }
   0x2   :  { %s18_s13 = sshll.u32 %s121_s12, 4  ;;  %s19_s13 = int_to_ptr.vmem [resolvable:$true] %s18_s13 }
   0x3   :  { %21 = dma.hbm_to_vmem [thread:$0]  %s17_s11, 512, %s19_s13, [#allocation3]  }
   0x4   :  { %117 = dma.done.wait [#allocation3], 512  }
   0x5   :  { %118 = vsyncadd [#allocation3], 4294966784  ;;  %v26_v0 = vld [vmem:[#allocation2] sm:$0xff]  ;;  %v27_v2 = vld [vmem:[#allocation2 + $0x8] sm:$0xff]  ;;  %s122_s21 = smov [#allocation5]   ;;  %s57_s25 = sshll.u32 %s158_s2, 4  ;;  %s58_s25 = int_to_ptr.hbm [resolvable:$true] %s57_s25 }
   0x6   :  { %v34_v1 = vld [vmem:[%s156_s0] sm:$0xff]  ;;  %v30_v3 = vmul.f32 0.99, %v26_v0  ;;  %v31_v5 = vmul.f32 0.99, %v27_v2  ;;  %v35_v6 = vld [vmem:[%s156_s0 + $0x8] sm:$0xff] }
   0x7   :  { %v38_v4 = vmul.f32 0.01, %v34_v1  ;;  %v28_v7 = vld [vmem:[#allocation2 + $0x10] sm:$0xff]  ;;  %v39_v10 = vmul.f32 0.01, %v35_v6  ;;  %v29_v13 = vld [vmem:[#allocation2 + $0x18] sm:$0xff] }
   0x8   :  { %v36_v8 = vld [vmem:[%s156_s0 + $0x10] sm:$0xff]  ;;  %v32_v11 = vmul.f32 0.99, %v28_v7  ;;  %v37_v14 = vld [vmem:[%s156_s0 + $0x18] sm:$0xff]  ;;  %s55_s22 = sshll.u32 %s122_s21, 4  ;;  %s56_s22 = int_to_ptr.vmem [resolvable:$true] %s55_s22 }
   0x9   :  { %v42_v9 = vadd.f32 %v38_v4, %v30_v3  ;;  %v40_v12 = vmul.f32 0.01, %v36_v8  ;;  %v43_v15 = vadd.f32 %v39_v10, %v31_v5  ;;  %v33_v17 = vmul.f32 0.99, %v29_v13 }
   0xa   :  { %v41_v18 = vmul.f32 0.01, %v37_v14 }
   0xb   :  { %46 = vst [vmem:[#allocation5] sm:$0xff] %v42_v9  ;;  %v44_v16 = vadd.f32 %v40_v12, %v32_v11 }
   0xc   :  { %47 = vst [vmem:[#allocation5 + $0x8] sm:$0xff] %v43_v15  ;;  %v45_v19 = vadd.f32 %v41_v18, %v33_v17 }
   0xd   :  { %48 = vst [vmem:[#allocation5 + $0x10] sm:$0xff] %v44_v16 }
   0xe   :  { %49 = vst [vmem:[#allocation5 + $0x18] sm:$0xff] %v45_v19 }
   0xf   :  { %60 = dma.vmem_to_hbm [thread:$0]  %s56_s22, 512, %s58_s25, [#allocation4]  }
  0x10   :  { %119 = dma.done.wait [#allocation4], 512  }
  0x11   :  { %120 = vsyncadd [#allocation4], 4294966784 }
  0x12   :  { %65 = vsyncpa [#allocation3], 1 }
  0x13   :  { %66 = vsyncpa [#allocation4], 1 }

</bundles_post_ra>
